<compile_context>
chip_gen: v5e
topology: v5e:2x2
jax: 0.10.0
libtpu: 0.0.40
codegen_flags: <defaults>
</compile_context>

<pallas_src>
import functools

import jax
import jax.numpy as jnp
from jax.experimental import pallas as pl
from jax.experimental.pallas import tpu as pltpu

_LANES = 128


def _flatten_to_lanes(x):
    """Flatten to a lane-dense (rows, 128) slab in the input's NATIVE dtype.

    No wrapper-side cast (kernel upcasts), no sublane padding (gridless
    full-array BlockSpec is exempt from the (8,128) block_shape rule).
    Zero lane-padding (when needed at all) is loss-neutral: both MSE operands
    get identical zeros (zero squared diff) and relu(-0) = 0.
    """
    flat = x.reshape(-1)
    n = flat.shape[0]
    rows = -(-n // _LANES)
    total = rows * _LANES
    if total != n:  # skipped for (2,4,16,16): 2048 == 16*128 exactly
        flat = jnp.pad(flat, (0, total - n))
    return flat.reshape(rows, _LANES)


def _fused_kernel(a_ref, b_ref, ci_ref, out_ref, *, inv_n, n):
    # In-kernel upcast (no-op for f32 inputs); safe on v5e (no bf16 VPU).
    a = a_ref[...].astype(jnp.float32)
    b = b_ref[...].astype(jnp.float32)
    ci = ci_ref[...].astype(jnp.float32)
    d = a - b
    pen = jnp.maximum(-ci, 0.0)
    # ONE fused cross-lane reduction; scale once after the reduce:
    #   loss = SSE/n + 100*sum(pen) = (SSE + (100*n)*sum(pen)) * (1/n)
    out_ref[0, 0] = jnp.sum(d * d + pen * (100.0 * n)) * inv_n


def _split_kernel(a_ref, b_ref, ci_ref, out_ref, *, inv_n):
    # Fallback when the Ci slab shape differs from the An slabs.
    a = a_ref[...].astype(jnp.float32)
    b = b_ref[...].astype(jnp.float32)
    ci = ci_ref[...].astype(jnp.float32)
    d = a - b
    sse = jnp.sum(d * d)
    penalty = jnp.sum(jnp.maximum(-ci, 0.0))
    out_ref[0, 0] = sse * inv_n + penalty * 100.0


@jax.jit
def loss_a(an_fvcb, an_gs, ci):
    assert an_fvcb.shape == an_gs.shape, "MSELoss requires matching shapes"
    n_an = an_fvcb.size  # unpadded element count -> mean uses the true n

    a2 = _flatten_to_lanes(an_fvcb)
    b2 = _flatten_to_lanes(an_gs)
    c2 = _flatten_to_lanes(ci)

    # Fuse the two reductions into one when the slabs line up
    # (true for the (2,4,16,16) case).
    if a2.shape == c2.shape:
        kernel = functools.partial(
            _fused_kernel, inv_n=1.0 / float(n_an), n=float(n_an))
    else:
        kernel = functools.partial(_split_kernel, inv_n=1.0 / float(n_an))

    out = pl.pallas_call(
        kernel,
        out_shape=jax.ShapeDtypeStruct((1, 1), jnp.float32),
        in_specs=[
            pl.BlockSpec(memory_space=pltpu.MemorySpace.VMEM),
            pl.BlockSpec(memory_space=pltpu.MemorySpace.VMEM),
            pl.BlockSpec(memory_space=pltpu.MemorySpace.VMEM),
        ],
        out_specs=pl.BlockSpec(memory_space=pltpu.MemorySpace.SMEM),
    )(a2, b2, c2)
    return out[0, 0]


@jax.jit
def loss_a_ref(an_fvcb, an_gs, ci):
    # pure-JAX reference mirroring the PyTorch forward
    mse = jnp.mean((an_fvcb - an_gs) ** 2)
    return mse + jnp.sum(jnp.maximum(-ci, 0.0)) * 100.0


if __name__ == "__main__":
    key = jax.random.PRNGKey(0)
    k1, k2, k3 = jax.random.split(key, 3)

    # small shapes consistent with the forward pass (elementwise + reductions)
    an_fvcb = jax.random.normal(k1, (2, 4, 16, 16), dtype=jnp.float32)
    an_gs = jax.random.normal(k2, (2, 4, 16, 16), dtype=jnp.float32)
    ci = jax.random.normal(k3, (2, 4, 16, 16), dtype=jnp.float32)

    out = jax.block_until_ready(loss_a(an_fvcb, an_gs, ci))
    ref = jax.block_until_ready(loss_a_ref(an_fvcb, an_gs, ci))

    assert jnp.allclose(out, ref, rtol=1e-5, atol=1e-5), (out, ref)
    print("KERNEL_OK")
</pallas_src>

<mosaic_0001>
module attributes {stable_mosaic.version = 11 : i64} {
  func.func @_fused_kernel(%arg0: memref<16x128xf32, #tpu.memory_space<vmem>>, %arg1: memref<16x128xf32, #tpu.memory_space<vmem>>, %arg2: memref<16x128xf32, #tpu.memory_space<vmem>>, %arg3: memref<1x1xf32, #tpu.memory_space<smem>>) attributes {dimension_semantics = [], scalar_prefetch = 0 : i64, scratch_operands = 0 : i64, tpu.core_type = #tpu.core_type<tc>} {
    %c0 = arith.constant 0 : index
    %c0_0 = arith.constant 0 : index
    %0 = vector.load %arg0[%c0, %c0_0] : memref<16x128xf32, #tpu.memory_space<vmem>>, vector<16x128xf32>
    %c0_1 = arith.constant 0 : index
    %c0_2 = arith.constant 0 : index
    %1 = vector.load %arg1[%c0_1, %c0_2] : memref<16x128xf32, #tpu.memory_space<vmem>>, vector<16x128xf32>
    %c0_3 = arith.constant 0 : index
    %c0_4 = arith.constant 0 : index
    %2 = vector.load %arg2[%c0_3, %c0_4] : memref<16x128xf32, #tpu.memory_space<vmem>>, vector<16x128xf32>
    %3 = arith.subf %0, %1 : vector<16x128xf32>
    %cst = arith.constant 0.000000e+00 : f32
    %4 = vector.broadcast %cst : f32 to vector<16x128xf32>
    %5 = arith.subf %4, %2 : vector<16x128xf32>
    %cst_5 = arith.constant 0.000000e+00 : f32
    %6 = vector.broadcast %cst_5 : f32 to vector<16x128xf32>
    %7 = arith.maximumf %5, %6 : vector<16x128xf32>
    %8 = arith.mulf %3, %3 : vector<16x128xf32>
    %cst_6 = arith.constant 2.048000e+05 : f32
    %9 = vector.broadcast %cst_6 : f32 to vector<16x128xf32>
    %10 = arith.mulf %7, %9 : vector<16x128xf32>
    %11 = arith.addf %8, %10 : vector<16x128xf32>
    %12 = vector.shape_cast %11 : vector<16x128xf32> to vector<1x16x128xf32>
    %cst_7 = arith.constant dense<0.000000e+00> : vector<1xf32>
    %13 = vector.multi_reduction <add>, %12, %cst_7 [1, 2] : vector<1x16x128xf32> to vector<1xf32>
    %14 = vector.shape_cast %13 : vector<1xf32> to vector<1x1x1xf32>
    %15 = vector.extract %14[0, 0, 0] : f32 from vector<1x1x1xf32>
    %cst_8 = arith.constant 4.8828125E-4 : f32
    %16 = arith.mulf %15, %cst_8 : f32
    %c0_9 = arith.constant 0 : index
    %c0_10 = arith.constant 0 : index
    %17 = memref.load %arg3[%c0_9, %c0_10] : memref<1x1xf32, #tpu.memory_space<smem>>
    memref.store %16, %arg3[%c0_9, %c0_10] : memref<1x1xf32, #tpu.memory_space<smem>>
    return
  }
}

</mosaic_0001>

<bundles_post_ra>
// kernel: loss_a.1
= control target key start
LH: loop header
LB: loop body
LE: loop exit
PB: predicated region body
PF: predicated region fallthrough
CT: control target
= control target key end

     0   :  { %s120_s0 = inlined_call_operand.vmem [shape: f32[16,128], index: 0, kind: input, shape index: {}]   ;;  %s121_s1 = inlined_call_operand.vmem [shape: f32[16,128], index: 1, kind: input, shape index: {}]   ;;  %s122_s2 = inlined_call_operand.vmem [shape: f32[16,128], index: 2, kind: input, shape index: {}]   ;;  %s123_s3 = inlined_call_operand.hbm [shape: f32[1,1], index: 3, kind: output, shape index: {}]  }
   0x1   :  { %v15_v0 = vld [vmem:[%s120_s0] sm:$0xff]  ;;  %v16_v1 = vld [vmem:[%s120_s0 + $0x8] sm:$0xff] }
   0x2   :  { %v17_v2 = vld [vmem:[%s121_s1] sm:$0xff]  ;;  %v18_v3 = vld [vmem:[%s121_s1 + $0x8] sm:$0xff] }
   0x3   :  { %v19_v4 = vld [vmem:[%s122_s2] sm:$0xff]  ;;  %v20_v5 = vld [vmem:[%s122_s2 + $0x8] sm:$0xff]  ;;  %v21_v6 = vsub.f32 %v15_v0, %v17_v2  ;;  %v22_v7 = vsub.f32 %v16_v1, %v18_v3 }
   0x4   :  { %v23_v8 = vsub.f32 0.0, %v19_v4  ;;  %v24_v9 = vsub.f32 0.0, %v20_v5 }
   0x5   :  { %8 = vsyncpa [#allocation3], 0  ;;  %v27_v12 = vmul.f32 %v21_v6, %v21_v6  ;;  %v28_v13 = vmul.f32 %v22_v7, %v22_v7  ;;  %s51_s2 = sshll.u32 %s123_s3, 4  ;;  %s78_s26 = smov [#allocation2]   ;;  %s52_s2 = int_to_ptr.hbm [resolvable:$true] %s51_s2 }
   0x6   :  { %v25_v10 = vmax.f32 %v23_v8, 0.0  ;;  %v26_v11 = vmax.f32 %v24_v9, 0.0 }
   0x8   :  { %v29_v14 = vmul.f32 204800.0, %v25_v10  ;;  %v30_v15 = vmul.f32 204800.0, %v26_v11 }
   0xa   :  { %v31_v16 = vadd.f32 %v29_v14, %v27_v12  ;;  %v32_v17 = vadd.f32 %v30_v15, %v28_v13 }
   0xc   :  { %v33_v18 = vadd.f32 %v32_v17, %v31_v16 }
   0xe   :  { %34 = vadd.xlane.f32.xlu0 %v33_v18 }
  0x81   :  { %v35_v19 = vpop.xlane.xlu0 %34 }
  0x82   :  { %v36_v20 = vrot.slane %v35_v19, 4 }
  0x84   :  { %v37_v21 = vadd.f32 %v36_v20, %v35_v19 }
  0x86   :  { %v38_v22 = vrot.slane %v37_v21, 2 }
  0x88   :  { %v39_v23 = vadd.f32 %v38_v22, %v37_v21 }
  0x8a   :  { %v40_v24 = vrot.slane %v39_v23, 1 }
  0x8c   :  { %v41_v25 = vadd.f32 %v40_v24, %v39_v23 }
  0x8e   :  { %61 = vpush %v41_v25 }
  0xbf   :  { %s62_s24 = spop %61 }
  0xc0   :  { %s43_s25 = smul.f32 0.00048828125, %s62_s24 }
  0xc2   :  { %45 = sst [smem:[#allocation2]] %s43_s25 }
  0xc3   :  { %54 = dma.smem_to_hbm %s78_s26, 16, %s52_s2, [#allocation3]  }
  0xc4   :  { %76 = dma.done.wait [#allocation3], 16  }
  0xc5   :  { %77 = vsyncadd [#allocation3], 4294967280 }
  0xc6   :  { %59 = sfence }
  0xc7   :  { %60 = vsyncpa [#allocation3], 1 }

</bundles_post_ra>
